<compile_context>
chip_gen: v7x
topology: tpu7x:2x2x1
jax: 0.10.0
libtpu: 0.0.40
codegen_flags: <defaults>
</compile_context>

<pallas_src>
import functools

import jax
import jax.numpy as jnp
from jax.experimental import pallas as pl
from jax.experimental.pallas import tpu as pltpu


def _kar_kernel(split, n_deep, matmul_dtype,
                user_ref, item_ref, w0u_ref, w0i_ref, b0_ref, *refs):
    """refs = [W_bd_1, b_1, ..., W_bd_{n_deep}, b_{n_deep}, reduce_mat, out_ref]."""
    out_ref = refs[-1]
    red_ref = refs[-2]

    u = user_ref[...].astype(matmul_dtype)            # (TB, user_dim)
    it = item_ref[...].astype(matmul_dtype)           # (TB, item_dim)

    # Fused layer-0 of ALL experts + (output-expanded) gate, in one wide matmul.
    z = (jnp.dot(u, w0u_ref[...], preferred_element_type=jnp.float32)
         + jnp.dot(it, w0i_ref[...], preferred_element_type=jnp.float32)
         + b0_ref[...])                               # (TB, E*H0 + E*O), f32

    h = jnp.maximum(z[:, :split], 0.0)                # (TB, E*H0)  expert hiddens
    gate = z[:, split:]                               # (TB, E*O)   gate[b, e*O + o] = gate_e(b)

    # Remaining expert layers: block-diagonal weights -> one full-width matmul each.
    for l in range(n_deep):
        w = refs[2 * l]                               # (E*H_in, E*H_out)
        b = refs[2 * l + 1]                           # (1, E*H_out)
        h = jnp.maximum(
            jnp.dot(h.astype(matmul_dtype), w[...],
                    preferred_element_type=jnp.float32) + b[...],
            0.0)

    # Gate-weighted sum over experts: elementwise scale + (E*O, O) reduce matmul.
    weighted = h * gate                               # (TB, E*O), f32
    out = jnp.dot(weighted.astype(matmul_dtype), red_ref[...],
                  preferred_element_type=jnp.float32)  # (TB, O)
    out_ref[...] = out.astype(out_ref.dtype)


def kar_forward(user_emb, item_emb, params, *, block_b=256,
                matmul_dtype=jnp.bfloat16):
    """Pallas implementation of KARModule.forward.

    params:
      expert_weights : list over layers of (E, d_in, d_out)
      expert_biases  : list over layers of (E, d_out)
      gate_w         : (user_dim + item_dim, E)
      gate_b         : (E,)
    """
    weights = params["expert_weights"]
    biases = params["expert_biases"]
    gate_w = params["gate_w"]
    gate_b = params["gate_b"].reshape(-1)

    B, user_dim = user_emb.shape
    Bi, item_dim = item_emb.shape
    assert B == Bi
    D = user_dim + item_dim
    E = gate_w.shape[1]
    O = weights[-1].shape[-1]
    H0 = weights[0].shape[-1]
    n_layers = len(weights)
    n_deep = n_layers - 1
    split = E * H0

    f32 = jnp.float32

    # ---- fold experts + gate into dense, lane-aligned operands (trace-time, once) ----
    # Layer 0 of all experts: (E, D, H0) -> (D, E*H0)
    w0 = jnp.transpose(weights[0].astype(f32), (1, 0, 2)).reshape(D, E * H0)
    b0 = biases[0].astype(f32).reshape(1, E * H0)
    # Gate, pre-expanded across the output dim: gw_exp[d, e*O + o] = gate_w[d, e]
    expand = jnp.kron(jnp.eye(E, dtype=f32), jnp.ones((1, O), f32))      # (E, E*O)
    gw_exp = gate_w.astype(f32) @ expand                                 # (D, E*O)
    gb_exp = (gate_b.astype(f32) @ expand).reshape(1, E * O)             # (1, E*O)

    w0_fused = jnp.concatenate([w0, gw_exp], axis=1)                     # (D, E*H0 + E*O)
    b0_fused = jnp.concatenate([b0, gb_exp], axis=1)                     # (1, E*H0 + E*O)
    # Split along D so the kernel never needs a concatenated `pair` activation.
    w0_user = w0_fused[:user_dim].astype(matmul_dtype)
    w0_item = w0_fused[user_dim:].astype(matmul_dtype)

    # Layers >= 1: block-diagonal (E*H_in, E*H_out); off-diagonal blocks are exact zeros.
    deep_operands = []
    eye_e = jnp.eye(E, dtype=f32)
    for l in range(1, n_layers):
        wl = weights[l].astype(f32)                                      # (E, h_in, h_out)
        h_in, h_out = wl.shape[1], wl.shape[2]
        wbd = jnp.einsum("eio,ef->eifo", wl, eye_e).reshape(E * h_in, E * h_out)
        bl = biases[l].astype(f32).reshape(1, E * h_out)
        deep_operands += [wbd.astype(matmul_dtype), bl]

    # (E*O, O) reduction matrix: sums the per-expert output blocks.
    reduce_mat = jnp.tile(jnp.eye(O, dtype=f32), (E, 1)).astype(matmul_dtype)

    # ---- batch tiling ----
    orig_b = B
    if B <= block_b:
        block_b = B
    else:
        block_b = max(8, (block_b // 8) * 8)
    pad = (-B) % block_b
    if pad:
        user_emb = jnp.pad(user_emb, ((0, pad), (0, 0)))
        item_emb = jnp.pad(item_emb, ((0, pad), (0, 0)))
        B = B + pad

    def vmem_spec():
        # Resident whole-array operand in VMEM (no per-step double buffering).
        return pl.BlockSpec(memory_space=pltpu.MemorySpace.VMEM)

    in_specs = [
        pl.BlockSpec((block_b, user_dim), lambda i: (i, 0)),
        pl.BlockSpec((block_b, item_dim), lambda i: (i, 0)),
        vmem_spec(), vmem_spec(), vmem_spec(),            # w0_user, w0_item, b0_fused
    ] + [vmem_spec() for _ in deep_operands] + [vmem_spec()]  # deep W/b + reduce_mat

    kernel = functools.partial(_kar_kernel, split, n_deep, matmul_dtype)
    out = pl.pallas_call(
        kernel,
        out_shape=jax.ShapeDtypeStruct((B, O), user_emb.dtype),
        grid=(B // block_b,),
        in_specs=in_specs,
        out_specs=pl.BlockSpec((block_b, O), lambda i: (i, 0)),
        compiler_params=pltpu.CompilerParams(
            dimension_semantics=("parallel",)),
    )(user_emb, item_emb, w0_user, w0_item, b0_fused, *deep_operands, reduce_mat)

    return out[:orig_b] if pad else out


if __name__ == "__main__":
    # Module hyper-parameters (small, but MXU/lane-friendly: E*H0 = E*O = 128).
    user_dim, item_dim = 16, 16
    output_dim = 32
    experts_num = 4
    experts_hidden_dim = [32]
    D = user_dim + item_dim
    B = 512  # two 256-row grid steps -> amortized pipeline overhead, both v7x TCs busy

    key = jax.random.PRNGKey(0)
    ks = jax.random.split(key, 16)

    user_emb = jax.random.normal(ks[0], (B, user_dim), jnp.float32)
    item_emb = jax.random.normal(ks[1], (B, item_dim), jnp.float32)

    # Deterministic synthetic parameters (shapes follow KARModule.__init__).
    arch = [D] + experts_hidden_dim + [output_dim]
    expert_weights, expert_biases = [], []
    kidx = 2
    for l in range(len(arch) - 1):
        expert_weights.append(
            0.1 * jax.random.normal(ks[kidx], (experts_num, arch[l], arch[l + 1]), jnp.float32))
        kidx += 1
        expert_biases.append(
            0.1 * jax.random.normal(ks[kidx], (experts_num, arch[l + 1]), jnp.float32))
        kidx += 1
    gate_w = 0.1 * jax.random.normal(ks[kidx], (D, experts_num), jnp.float32)
    kidx += 1
    gate_b = 0.1 * jax.random.normal(ks[kidx], (experts_num,), jnp.float32)

    params = dict(
        expert_weights=expert_weights,
        expert_biases=expert_biases,
        gate_w=gate_w,
        gate_b=gate_b,
    )

    out = kar_forward(user_emb, item_emb, params, block_b=256)
    out = jax.block_until_ready(out)

    # Pure-JAX reference (mirrors the PyTorch forward exactly, f32 throughout).
    pair = jnp.concatenate([user_emb, item_emb], axis=-1)
    gate = pair @ gate_w + gate_b                            # (B, E), no softmax
    expert_outs = []
    for e in range(experts_num):
        h = pair
        for w, b in zip(expert_weights, expert_biases):
            h = jnp.maximum(h @ w[e] + b[e], 0.0)            # Linear + ReLU (incl. last layer)
        expert_outs.append(h)
    experts = jnp.stack(expert_outs, axis=-1)                # (B, O, E)
    ref = jnp.einsum("boe,be->bo", experts, gate)            # matmul(experts, gate[...,None]).squeeze

    # bf16 matmul operands with f32 accumulation -> relaxed tolerance vs f32 reference.
    max_err = jnp.max(jnp.abs(out - ref))
    assert jnp.allclose(out, ref, atol=2e-2, rtol=2e-2), f"mismatch vs reference: {max_err}"
    print("KERNEL_OK")
</pallas_src>

<mosaic_0001>
module attributes {stable_mosaic.version = 11 : i64} {
  func.func @_kar_kernel(%arg0: i32, %arg1: memref<256x16xf32, #tpu.memory_space<vmem>>, %arg2: memref<256x16xf32, #tpu.memory_space<vmem>>, %arg3: memref<16x256xbf16, #tpu.memory_space<vmem>>, %arg4: memref<16x256xbf16, #tpu.memory_space<vmem>>, %arg5: memref<1x256xf32, #tpu.memory_space<vmem>>, %arg6: memref<128x128xbf16, #tpu.memory_space<vmem>>, %arg7: memref<1x128xf32, #tpu.memory_space<vmem>>, %arg8: memref<128x32xbf16, #tpu.memory_space<vmem>>, %arg9: memref<256x32xf32, #tpu.memory_space<vmem>>) attributes {dimension_semantics = [#tpu.dimension_semantics<parallel>], iteration_bounds = array<i64: 2>, scalar_prefetch = 0 : i64, scratch_operands = 0 : i64, tpu.core_type = #tpu.core_type<tc>, window_params = [{transform_indices = @transform_0, window_bounds = array<i64: 256, 16>}, {transform_indices = @transform_1, window_bounds = array<i64: 256, 16>}, {pipeline_mode = #tpu.pipeline_mode<synchronous>, transform_indices = @transform_2, window_bounds = array<i64: 16, 256>}, {pipeline_mode = #tpu.pipeline_mode<synchronous>, transform_indices = @transform_3, window_bounds = array<i64: 16, 256>}, {pipeline_mode = #tpu.pipeline_mode<synchronous>, transform_indices = @transform_4, window_bounds = array<i64: 1, 256>}, {pipeline_mode = #tpu.pipeline_mode<synchronous>, transform_indices = @transform_5, window_bounds = array<i64: 128, 128>}, {pipeline_mode = #tpu.pipeline_mode<synchronous>, transform_indices = @transform_6, window_bounds = array<i64: 1, 128>}, {pipeline_mode = #tpu.pipeline_mode<synchronous>, transform_indices = @transform_7, window_bounds = array<i64: 128, 32>}, {transform_indices = @transform_8, window_bounds = array<i64: 256, 32>}]} {
    %c0 = arith.constant 0 : index
    %c0_0 = arith.constant 0 : index
    %0 = vector.load %arg1[%c0, %c0_0] : memref<256x16xf32, #tpu.memory_space<vmem>>, vector<256x16xf32>
    %1 = arith.truncf %0 : vector<256x16xf32> to vector<256x16xbf16>
    %c0_1 = arith.constant 0 : index
    %c0_2 = arith.constant 0 : index
    %2 = vector.load %arg2[%c0_1, %c0_2] : memref<256x16xf32, #tpu.memory_space<vmem>>, vector<256x16xf32>
    %3 = arith.truncf %2 : vector<256x16xf32> to vector<256x16xbf16>
    %c0_3 = arith.constant 0 : index
    %c0_4 = arith.constant 0 : index
    %4 = vector.load %arg3[%c0_3, %c0_4] : memref<16x256xbf16, #tpu.memory_space<vmem>>, vector<16x256xbf16>
    %cst = arith.constant dense<0.000000e+00> : vector<256x256xf32>
    %5 = tpu.matmul %1, %4, %cst {dimension_numbers = #tpu.dot_dimension_numbers<[1], [0], [0], [1], [0, 0, 1, 1], [], []>} : vector<256x16xbf16>, vector<16x256xbf16>, vector<256x256xf32> -> vector<256x256xf32>
    %c0_5 = arith.constant 0 : index
    %c0_6 = arith.constant 0 : index
    %6 = vector.load %arg4[%c0_5, %c0_6] : memref<16x256xbf16, #tpu.memory_space<vmem>>, vector<16x256xbf16>
    %cst_7 = arith.constant dense<0.000000e+00> : vector<256x256xf32>
    %7 = tpu.matmul %3, %6, %cst_7 {dimension_numbers = #tpu.dot_dimension_numbers<[1], [0], [0], [1], [0, 0, 1, 1], [], []>} : vector<256x16xbf16>, vector<16x256xbf16>, vector<256x256xf32> -> vector<256x256xf32>
    %8 = arith.addf %5, %7 : vector<256x256xf32>
    %c0_8 = arith.constant 0 : index
    %c0_9 = arith.constant 0 : index
    %9 = vector.load %arg5[%c0_8, %c0_9] : memref<1x256xf32, #tpu.memory_space<vmem>>, vector<1x256xf32>
    %10 = vector.broadcast %9 : vector<1x256xf32> to vector<256x256xf32>
    %11 = arith.addf %8, %10 : vector<256x256xf32>
    %12 = vector.extract_strided_slice %11 {offsets = [0, 0], sizes = [256, 128], strides = [1, 1]} : vector<256x256xf32> to vector<256x128xf32>
    %cst_10 = arith.constant 0.000000e+00 : f32
    %13 = vector.broadcast %cst_10 : f32 to vector<256x128xf32>
    %14 = arith.maximumf %12, %13 : vector<256x128xf32>
    %15 = vector.extract_strided_slice %11 {offsets = [0, 128], sizes = [256, 128], strides = [1, 1]} : vector<256x256xf32> to vector<256x128xf32>
    %16 = arith.truncf %14 : vector<256x128xf32> to vector<256x128xbf16>
    %c0_11 = arith.constant 0 : index
    %c0_12 = arith.constant 0 : index
    %17 = vector.load %arg6[%c0_11, %c0_12] : memref<128x128xbf16, #tpu.memory_space<vmem>>, vector<128x128xbf16>
    %cst_13 = arith.constant dense<0.000000e+00> : vector<256x128xf32>
    %18 = tpu.matmul %16, %17, %cst_13 {dimension_numbers = #tpu.dot_dimension_numbers<[1], [0], [0], [1], [0, 0, 1, 1], [], []>} : vector<256x128xbf16>, vector<128x128xbf16>, vector<256x128xf32> -> vector<256x128xf32>
    %c0_14 = arith.constant 0 : index
    %c0_15 = arith.constant 0 : index
    %19 = vector.load %arg7[%c0_14, %c0_15] : memref<1x128xf32, #tpu.memory_space<vmem>>, vector<1x128xf32>
    %20 = vector.broadcast %19 : vector<1x128xf32> to vector<256x128xf32>
    %21 = arith.addf %18, %20 : vector<256x128xf32>
    %cst_16 = arith.constant 0.000000e+00 : f32
    %22 = vector.broadcast %cst_16 : f32 to vector<256x128xf32>
    %23 = arith.maximumf %21, %22 : vector<256x128xf32>
    %24 = arith.mulf %23, %15 : vector<256x128xf32>
    %25 = arith.truncf %24 : vector<256x128xf32> to vector<256x128xbf16>
    %c0_17 = arith.constant 0 : index
    %c0_18 = arith.constant 0 : index
    %26 = vector.load %arg8[%c0_17, %c0_18] : memref<128x32xbf16, #tpu.memory_space<vmem>>, vector<128x32xbf16>
    %cst_19 = arith.constant dense<0.000000e+00> : vector<256x32xf32>
    %27 = tpu.matmul %25, %26, %cst_19 {dimension_numbers = #tpu.dot_dimension_numbers<[1], [0], [0], [1], [0, 0, 1, 1], [], []>} : vector<256x128xbf16>, vector<128x32xbf16>, vector<256x32xf32> -> vector<256x32xf32>
    %c0_20 = arith.constant 0 : index
    %c0_21 = arith.constant 0 : index
    %28 = vector.load %arg9[%c0_20, %c0_21] : memref<256x32xf32, #tpu.memory_space<vmem>>, vector<256x32xf32>
    tpu.vector_store %arg9[%c0_20, %c0_21], %27 {strides = array<i32>} : memref<256x32xf32, #tpu.memory_space<vmem>>, vector<256x32xf32>,
    return
  }
  func.func @transform_0(%arg0: i32) -> (i32, i32) {
    %c0_i32 = arith.constant 0 : i32
    %c0_i32_0 = arith.constant 0 : i32
    return %arg0, %c0_i32 : i32, i32
  }
  func.func @transform_1(%arg0: i32) -> (i32, i32) {
    %c0_i32 = arith.constant 0 : i32
    %c0_i32_0 = arith.constant 0 : i32
    return %arg0, %c0_i32 : i32, i32
  }
  func.func @transform_2(%arg0: i32) -> (i32, i32) {
    %c0_i32 = arith.constant 0 : i32
    %c0_i32_0 = arith.constant 0 : i32
    %c0_i32_1 = arith.constant 0 : i32
    return %c0_i32, %c0_i32_0 : i32, i32
  }
  func.func @transform_3(%arg0: i32) -> (i32, i32) {
    %c0_i32 = arith.constant 0 : i32
    %c0_i32_0 = arith.constant 0 : i32
    %c0_i32_1 = arith.constant 0 : i32
    return %c0_i32, %c0_i32_0 : i32, i32
  }
  func.func @transform_4(%arg0: i32) -> (i32, i32) {
    %c0_i32 = arith.constant 0 : i32
    %c0_i32_0 = arith.constant 0 : i32
    %c0_i32_1 = arith.constant 0 : i32
    return %c0_i32, %c0_i32_0 : i32, i32
  }
  func.func @transform_5(%arg0: i32) -> (i32, i32) {
    %c0_i32 = arith.constant 0 : i32
    %c0_i32_0 = arith.constant 0 : i32
    %c0_i32_1 = arith.constant 0 : i32
    return %c0_i32, %c0_i32_0 : i32, i32
  }
  func.func @transform_6(%arg0: i32) -> (i32, i32) {
    %c0_i32 = arith.constant 0 : i32
    %c0_i32_0 = arith.constant 0 : i32
    %c0_i32_1 = arith.constant 0 : i32
    return %c0_i32, %c0_i32_0 : i32, i32
  }
  func.func @transform_7(%arg0: i32) -> (i32, i32) {
    %c0_i32 = arith.constant 0 : i32
    %c0_i32_0 = arith.constant 0 : i32
    %c0_i32_1 = arith.constant 0 : i32
    return %c0_i32, %c0_i32_0 : i32, i32
  }
  func.func @transform_8(%arg0: i32) -> (i32, i32) {
    %c0_i32 = arith.constant 0 : i32
    %c0_i32_0 = arith.constant 0 : i32
    return %arg0, %c0_i32 : i32, i32
  }
}

</mosaic_0001>

<bundles_post_ra>
// kernel: tpu_custom_call.1
= control target key start
LH: loop header
LB: loop body
LE: loop exit
PB: predicated region body
PF: predicated region fallthrough
CT: control target
= control target key end

     0   :  { %s2058_s27 = smov 0   ;;  %s2649_s0 = inlined_call_operand.vmem [shape: f32[512,16], index: 0, kind: input, shape index: {}]   ;;  %s2650_s1 = inlined_call_operand.vmem [shape: f32[512,16], index: 1, kind: input, shape index: {}]   ;;  %s2651_s2 = inlined_call_operand.vmem [shape: bf16[16,256], index: 2, kind: input, shape index: {}]   ;;  %s2652_s3 = inlined_call_operand.vmem [shape: bf16[16,256], index: 3, kind: input, shape index: {}]   ;;  %s2653_s4 = inlined_call_operand.vmem [shape: f32[1,256], index: 4, kind: input, shape index: {}]   ;;  %s2654_s5 = inlined_call_operand.vmem [shape: bf16[128,128], index: 5, kind: input, shape index: {}]   ;;  %s2655_s6 = inlined_call_operand.vmem [shape: f32[1,128], index: 6, kind: input, shape index: {}]   ;;  %s2656_s7 = inlined_call_operand.vmem [shape: bf16[128,32], index: 7, kind: input, shape index: {}]   ;;  %s2657_s8 = inlined_call_operand.vmem [shape: f32[512,32], index: 8, kind: output, shape index: {}]  }
   0x1 LB: > { %s1697_s28 = sadd.s32 4294967295, %s2010_s27   ;;  %p1701_p0 = scmp.ge.s32.totalorder %s2010_s27, 1  ;;  %s2010_s27 = sphi %s2058_s27, %s18_s27  }
   0x2   : > { %p274_p1 = scmp.lt.s32.totalorder %s2010_s27, 3 }
   0x4   : > { %p275_p2 = pnand %p1701_p0, %p274_p1 }
   0x5   : > { %v1982_v0 = vld [vmem:[%s2652_s3 + $0x4] ss:$8 sps:$4 sm:$0xff] (!%p275_p2)   ;;  %s1702_s9 = sshll.u32 (!%p275_p2), %s1697_s28, 5  ;;  %v1984_v1 = vld [vmem:[%s2652_s3] ss:$8 sps:$4 sm:$0xff] (!%p275_p2)   ;;  %v2012_v2 = vmov (!%p275_p2), 0  }
   0x6   : > { %278 = sbr.rel (%p275_p2) target bundleno = 865 (0x361), region = 52  ;;  %523 = vmatprep.mubr.bf16.mxu0 (!%p275_p2), %v2012_v2  ;;  %p314_p3 = scmp.lt.s32.totalorder (!%p275_p2), %s1702_s9, 63  ;;  %603 = vmatprep.mubr.bf16.mxu1 (!%p275_p2), %v2012_v2  ;;  %v1987_v3 = vld [vmem:[%s2651_s2 + $0x4] ss:$8 sps:$4 sm:$0xff] (!%p275_p2)   ;;  %v1985_v4 = vld [vmem:[%s2651_s2] ss:$8 sps:$4 sm:$0xff] (!%p275_p2)  }
   0x7   : > { %491 = vmatprep.subr.bf16.mxu0 (!%p275_p2), %v1982_v0  ;;  %1907 = vmatprep.subr.bf16.mxu1 (!%p275_p2), %v1982_v0  ;;  %vm442_vm0 = vcmask (!%p275_p2), 130048   ;;  %v1988_v50 = vld [vmem:[%s2654_s5] sm:$0xff] (!%p275_p2)   ;;  %v1989_v53 = vld [vmem:[%s2654_s5 + $0x8] sm:$0xff] (!%p275_p2)   ;;  %v1990_v57 = vld [vmem:[%s2654_s5 + $0x10] sm:$0xff] (!%p275_p2)   ;;  %vm1596_vm1 = vcmask (!%p275_p2), 261120  }
   0x8   : > { %492 = vmatpush1.bf16.msra.mxu0 (!%p275_p2), %v1984_v1  ;;  %1908 = vmatpush1.bf16.msra.mxu1 (!%p275_p2), %v1984_v1  ;;  %v1991_v61 = vld [vmem:[%s2654_s5 + $0x18] sm:$0xff] (!%p275_p2)  }
   0x9   : > { %742 = vmatprep.subr.bf16.mxu0 (!%p275_p2), %v1987_v3  ;;  %1811 = vmatprep.subr.bf16.mxu1 (!%p275_p2), %v1988_v50 }
   0xd   : > { %s2659_s9 = smov (!%p314_p3, %s1702_s9), 63 }
   0xe   : > { %s2077_s14 = sshll.u32 %s2659_s9, 3 }
   0xf   : > { %s2083_s17 = scalar_lea.vmem %s2650_s1, %s2077_s14  ;;  %s2148_s22 = scalar_lea.vmem %s2649_s0, %s2077_s14 }
  0x10   : > { %v380_v5 = vld [vmem:[%s2083_s17] sm:$0xff]  ;;  %v381_v6 = vld [vmem:[%s2083_s17 + $0x8] sm:$0xff]  ;;  %v382_v8 = vld [vmem:[%s2083_s17 + $0x10] sm:$0xff]  ;;  %s2580_s21 = scalar_lea.vmem %s2657_s8, %s2077_s14 }
  0x11   : > { %v412_v7 = vpack.c.bf16 %v381_v6, %v380_v5  ;;  %v383_v9 = vld [vmem:[%s2083_s17 + $0x18] sm:$0xff]  ;;  %v396_v11 = vld [vmem:[%s2083_s17 + $0x80] sm:$0xff]  ;;  %v397_v12 = vld [vmem:[%s2083_s17 + $0x88] sm:$0xff] }
  0x12   : > { %v413_v10 = vpack.c.bf16 %v383_v9, %v382_v8  ;;  %v384_v13 = vld [vmem:[%s2083_s17 + $0x20] sm:$0xff]  ;;  %v385_v14 = vld [vmem:[%s2083_s17 + $0x28] sm:$0xff]  ;;  %v420_v15 = vpack.c.bf16 %v397_v12, %v396_v11  ;;  %v398_v16 = vld [vmem:[%s2083_s17 + $0x90] sm:$0xff] }
  0x13   : > { %1710 = vmatmul.mubr.msk.bf16.vlgmr.msra.gmra.mrb[0].mxu0 %vm442_vm0, %v412_v7  ;;  %v399_v17 = vld [vmem:[%s2083_s17 + $0x98] sm:$0xff]  ;;  %v414_v18 = vpack.c.bf16 %v385_v14, %v384_v13  ;;  %v386_v20 = vld [vmem:[%s2083_s17 + $0x30] sm:$0xff]  ;;  %v400_v23 = vld [vmem:[%s2083_s17 + $0xa0] sm:$0xff] }
  0x14   : > { %743 = vmatpush1.bf16.msra.mxu0 %v1985_v4  ;;  %533 = vmatprep.mubr.bf16.mxu0 %v2012_v2  ;;  %v421_v19 = vpack.c.bf16 %v399_v17, %v398_v16  ;;  %v387_v21 = vld [vmem:[%s2083_s17 + $0x38] sm:$0xff]  ;;  %v401_v24 = vld [vmem:[%s2083_s17 + $0xa8] sm:$0xff]  ;;  %v388_v26 = vld [vmem:[%s2083_s17 + $0x40] sm:$0xff] }
  0x15   : > { %1718 = vmatmul.mubr.msk.bf16.vlgmr.msra.gmra.mrb[0].mxu1 %vm442_vm0, %v420_v15  ;;  %v415_v22 = vpack.c.bf16 %v387_v21, %v386_v20  ;;  %v422_v25 = vpack.c.bf16 %v401_v24, %v400_v23  ;;  %v389_v27 = vld [vmem:[%s2083_s17 + $0x48] sm:$0xff]  ;;  %v402_v29 = vld [vmem:[%s2083_s17 + $0xb0] sm:$0xff]  ;;  %v403_v30 = vld [vmem:[%s2083_s17 + $0xb8] sm:$0xff] }
  0x16   : > { %613 = vmatprep.mubr.bf16.mxu1 %v2012_v2  ;;  %v416_v28 = vpack.c.bf16 %v389_v27, %v388_v26  ;;  %v423_v31 = vpack.c.bf16 %v403_v30, %v402_v29  ;;  %v390_v32 = vld [vmem:[%s2083_s17 + $0x50] sm:$0xff]  ;;  %v391_v33 = vld [vmem:[%s2083_s17 + $0x58] sm:$0xff]  ;;  %v404_v35 = vld [vmem:[%s2083_s17 + $0xc0] sm:$0xff]  ;;  %1812 = vmatpush3.bf16.msra.mxu1 %v1988_v50  ;;  %v937_v27 = vlaneseq }
  0x17   : > { %v417_v34 = vpack.c.bf16 %v391_v33, %v390_v32  ;;  %v405_v36 = vld [vmem:[%s2083_s17 + $0xc8] sm:$0xff]  ;;  %v392_v38 = vld [vmem:[%s2083_s17 + $0x60] sm:$0xff]  ;;  %v406_v41 = vld [vmem:[%s2083_s17 + $0xd0] sm:$0xff]  ;;  %1813 = vmatprep.subr.bf16.mxu1 %v1989_v53 }
  0x18   : > { %v424_v37 = vpack.c.bf16 %v405_v36, %v404_v35  ;;  %v393_v39 = vld [vmem:[%s2083_s17 + $0x68] sm:$0xff]  ;;  %v407_v42 = vld [vmem:[%s2083_s17 + $0xd8] sm:$0xff]  ;;  %v394_v44 = vld [vmem:[%s2083_s17 + $0x70] sm:$0xff] }
  0x19   : > { %v418_v40 = vpack.c.bf16 %v393_v39, %v392_v38  ;;  %v425_v43 = vpack.c.bf16 %v407_v42, %v406_v41  ;;  %v395_v45 = vld [vmem:[%s2083_s17 + $0x78] sm:$0xff]  ;;  %v408_v47 = vld [vmem:[%s2083_s17 + $0xe0] sm:$0xff]  ;;  %v409_v48 = vld [vmem:[%s2083_s17 + $0xe8] sm:$0xff] }
  0x1a   : > { %v419_v46 = vpack.c.bf16 %v395_v45, %v394_v44  ;;  %v426_v49 = vpack.c.bf16 %v409_v48, %v408_v47  ;;  %v332_v51 = vld [vmem:[%s2148_s22] sm:$0xff]  ;;  %v333_v52 = vld [vmem:[%s2148_s22 + $0x8] sm:$0xff]  ;;  %v410_v55 = vld [vmem:[%s2083_s17 + $0xf0] sm:$0xff]  ;;  %1814 = vmatpush3.bf16.msra.mxu1 %v1989_v53 }
  0x1b   : > { %1711 = vmatmul.mubr.msk.bf16.gmra.mrb[4].mxu0 %vm442_vm0, %v413_v10  ;;  %v364_v54 = vpack.c.bf16 %v333_v52, %v332_v51  ;;  %v411_v56 = vld [vmem:[%s2083_s17 + $0xf8] sm:$0xff]  ;;  %v334_v59 = vld [vmem:[%s2148_s22 + $0x10] sm:$0xff]  ;;  %1815 = vmatprep.subr.bf16.mxu1 %v1990_v57  ;;  %v336_v63 = vld [vmem:[%s2148_s22 + $0x20] sm:$0xff] }
  0x1c   : > { %543 = vmatprep.mubr.bf16.mxu0 %v2012_v2  ;;  %v427_v58 = vpack.c.bf16 %v411_v56, %v410_v55  ;;  %v335_v60 = vld [vmem:[%s2148_s22 + $0x18] sm:$0xff]  ;;  %v337_v0 = vld [vmem:[%s2148_s22 + $0x28] sm:$0xff]  ;;  %v338_v3 = vld [vmem:[%s2148_s22 + $0x30] sm:$0xff] }
  0x1d   : > { %1719 = vmatmul.mubr.msk.bf16.gmra.mrb[4].mxu1 %vm442_vm0, %v421_v19  ;;  %v365_v62 = vpack.c.bf16 %v335_v60, %v334_v59  ;;  %v366_v1 = vpack.c.bf16 %v337_v0, %v336_v63  ;;  %v339_v4 = vld [vmem:[%s2148_s22 + $0x38] sm:$0xff]  ;;  %v340_v6 = vld [vmem:[%s2148_s22 + $0x40] sm:$0xff]  ;;  %v341_v7 = vld [vmem:[%s2148_s22 + $0x48] sm:$0xff] }
  0x1e   : > { %623 = vmatprep.mubr.bf16.mxu1 %v2012_v2  ;;  %1816 = vmatpush3.bf16.msra.mxu1 %v1990_v57  ;;  %v367_v5 = vpack.c.bf16 %v339_v4, %v338_v3  ;;  %v368_v8 = vpack.c.bf16 %v341_v7, %v340_v6  ;;  %v342_v9 = vld [vmem:[%s2148_s22 + $0x50] sm:$0xff]  ;;  %v343_v10 = vld [vmem:[%s2148_s22 + $0x58] sm:$0xff]  ;;  %v344_v12 = vld [vmem:[%s2148_s22 + $0x60] sm:$0xff] }
  0x1f   : > { %1817 = vmatprep.subr.bf16.mxu1 %v1991_v61  ;;  %v369_v11 = vpack.c.bf16 %v343_v10, %v342_v9  ;;  %v345_v13 = vld [vmem:[%s2148_s22 + $0x68] sm:$0xff]  ;;  %v346_v15 = vld [vmem:[%s2148_s22 + $0x70] sm:$0xff]  ;;  %v347_v16 = vld [vmem:[%s2148_s22 + $0x78] sm:$0xff] }
  0x20   : > { %v370_v14 = vpack.c.bf16 %v345_v13, %v344_v12  ;;  %v371_v17 = vpack.c.bf16 %v347_v16, %v346_v15  ;;  %v349_v19 = vld [vmem:[%s2148_s22 + $0x88] sm:$0xff]  ;;  %v350_v21 = vld [vmem:[%s2148_s22 + $0x90] sm:$0xff]  ;;  %v352_v24 = vld [vmem:[%s2148_s22 + $0xa0] sm:$0xff] }
  0x21   : > { %v354_v29 = vld [vmem:[%s2148_s22 + $0xb0] sm:$0xff]  ;;  %v355_v30 = vld [vmem:[%s2148_s22 + $0xb8] sm:$0xff]  ;;  %v1992_v33 = vld [vmem:[%s2654_s5 + $0x20] sm:$0xff]  }
  0x22   : > { %1818 = vmatpush3.bf16.msra.mxu1 %v1991_v61  ;;  %v375_v35 = vpack.c.bf16 %v355_v30, %v354_v29  ;;  %v1993_v36 = vld [vmem:[%s2654_s5 + $0x28] sm:$0xff]   ;;  %v1994_v39 = vld [vmem:[%s2654_s5 + $0x30] sm:$0xff]   ;;  %v1995_v41 = vld [vmem:[%s2654_s5 + $0x38] sm:$0xff]  }
  0x23   : > { %1712 = vmatmul.mubr.msk.bf16.gmra.mrb[8].mxu0 %vm442_vm0, %v414_v18  ;;  %v348_v18 = vld [vmem:[%s2148_s22 + $0x80] sm:$0xff]  ;;  %1819 = vmatprep.subr.bf16.mxu1 %v1992_v33  ;;  %v357_v38 = vld [vmem:[%s2148_s22 + $0xc8] sm:$0xff]  ;;  %v358_v42 = vld [vmem:[%s2148_s22 + $0xd0] sm:$0xff] }
  0x24   : > { %553 = vmatprep.mubr.bf16.mxu0 %v2012_v2  ;;  %v372_v20 = vpack.c.bf16 %v349_v19, %v348_v18  ;;  %v360_v45 = vld [vmem:[%s2148_s22 + $0xe0] sm:$0xff]  ;;  %v362_v48 = vld [vmem:[%s2148_s22 + $0xf0] sm:$0xff] }
  0x25   : > { %1720 = vmatmul.mubr.msk.bf16.gmra.mrb[8].mxu1 %vm442_vm0, %v422_v25  ;;  %v353_v25 = vld [vmem:[%s2148_s22 + $0xa8] sm:$0xff] }
  0x26   : > { %633 = vmatprep.mubr.bf16.mxu1 %v2012_v2  ;;  %v374_v26 = vpack.c.bf16 %v353_v25, %v352_v24  ;;  %1820 = vmatpush3.bf16.msra.mxu1 %v1992_v33  ;;  %v1996_v24 = vld [vmem:[%s2656_s7] sm:$0xff]  }
  0x27   : > { %1821 = vmatprep.subr.bf16.mxu1 %v1993_v36 }
  0x2a   : > { %1822 = vmatpush3.bf16.msra.mxu1 %v1993_v36 }
  0x2b   : > { %1713 = vmatmul.mubr.msk.bf16.gmra.mrb[12].mxu0 %vm442_vm0, %v415_v22  ;;  %v351_v22 = vld [vmem:[%s2148_s22 + $0x98] sm:$0xff]  ;;  %1823 = vmatprep.subr.bf16.mxu1 %v1994_v39 }
  0x2c   : > { %563 = vmatprep.mubr.bf16.mxu0 %v2012_v2  ;;  %v373_v23 = vpack.c.bf16 %v351_v22, %v350_v21 }
  0x2d   : > { %1721 = vmatmul.mubr.msk.bf16.gmra.mrb[12].mxu1 %vm442_vm0, %v423_v31  ;;  %v2220_v31 = vld [vmem:[%s2653_s4] sm:$0x3] }
  0x2e   : > { %643 = vmatprep.mubr.bf16.mxu1 %v2012_v2  ;;  %1824 = vmatpush3.bf16.msra.mxu1 %v1994_v39 }
  0x2f   : > { %1825 = vmatprep.subr.bf16.mxu1 %v1995_v41 }
  0x32   : > { %1826 = vmatpush3.bf16.msra.mxu1 %v1995_v41  ;;  %v1997_v41 = vld [vmem:[%s2656_s7 + $0x8] sm:$0xff]  }
  0x33   : > { %1714 = vmatmul.mubr.msk.bf16.gmra.mrb[16].mxu0 %vm442_vm0, %v416_v28  ;;  %v2211_v28 = vshrl.u32 %v937_v27, 7  ;;  %1859 = vmatprep.subr.bf16.mxu1 %v1996_v24 }
  0x34   : > { %573 = vmatprep.mubr.bf16.mxu0 %v2012_v2 }
  0x35   : > { %1722 = vmatmul.mubr.msk.bf16.gmra.mrb[16].mxu1 %vm442_vm0, %v424_v37  ;;  %v943_v32 = vsub.s32 1, %v2211_v28  ;;  %v356_v37 = vld [vmem:[%s2148_s22 + $0xc0] sm:$0xff] }
  0x36   : > { %653 = vmatprep.mubr.bf16.mxu1 %v2012_v2 }
  0x3b   : > { %1715 = vmatmul.mubr.msk.bf16.gmra.mrb[20].mxu0 %vm442_vm0, %v417_v34  ;;  %v2227_v34 = vrot.slane %v2220_v31, %v943_v32 }
  0x3c   : > { %583 = vmatprep.mubr.bf16.mxu0 %v2012_v2 }
  0x3d   : > { %1723 = vmatmul.mubr.msk.bf16.gmra.mrb[20].mxu1 %vm442_vm0, %v425_v43  ;;  %v359_v43 = vld [vmem:[%s2148_s22 + $0xd8] sm:$0xff] }
  0x3e   : > { %663 = vmatprep.mubr.bf16.mxu1 %v2012_v2  ;;  %v377_v44 = vpack.c.bf16 %v359_v43, %v358_v42 }
  0x43   : > { %1716 = vmatmul.mubr.msk.bf16.gmra.mrb[24].mxu0 %vm442_vm0, %v418_v40  ;;  %v376_v40 = vpack.c.bf16 %v357_v38, %v356_v37 }
  0x44   : > { %593 = vmatprep.mubr.bf16.mxu0 %v2012_v2 }
  0x45   : > { %1724 = vmatmul.mubr.msk.bf16.gmra.mrb[24].mxu1 %vm442_vm0, %v426_v49  ;;  %v363_v49 = vld [vmem:[%s2148_s22 + $0xf8] sm:$0xff] }
  0x46   : > { %673 = vmatprep.mubr.bf16.mxu1 %v2012_v2  ;;  %v379_v50 = vpack.c.bf16 %v363_v49, %v362_v48  ;;  %v1998_v48 = vld [vmem:[%s2656_s7 + $0x10] sm:$0xff]  }
  0x4b   : > { %1717 = vmatmul.mubr.msk.bf16.gmra.mrb[28].mxu0 %vm442_vm0, %v419_v46  ;;  %v361_v46 = vld [vmem:[%s2148_s22 + $0xe8] sm:$0xff] }
  0x4c   : > { %774 = vmatprep.mubr.bf16.mxu0 %v2012_v2  ;;  %v378_v47 = vpack.c.bf16 %v361_v46, %v360_v45 }
  0x4d   : > { %1725 = vmatmul.mubr.msk.bf16.gmra.mrb[28].mxu1 %vm442_vm0, %v427_v58 }
  0x53   : > { %1728 = vmatmul.mubr.msk.bf16.vlgmr.msra.gmra.mrb[0].mxu0 %vm442_vm0, %v364_v54 }
  0x54   : > { %784 = vmatprep.mubr.bf16.mxu0 %v2012_v2 }
  0x5b   : > { %1729 = vmatmul.mubr.msk.bf16.gmra.mrb[4].mxu0 %vm442_vm0, %v365_v62 }
  0x5c   : > { %794 = vmatprep.mubr.bf16.mxu0 %v2012_v2 }
  0x63   : > { %1730 = vmatmul.mubr.msk.bf16.gmra.mrb[8].mxu0 %vm442_vm0, %v366_v1 }
  0x64   : > { %804 = vmatprep.mubr.bf16.mxu0 %v2012_v2 }
  0x6b   : > { %1731 = vmatmul.mubr.msk.bf16.gmra.mrb[12].mxu0 %vm442_vm0, %v367_v5 }
  0x6c   : > { %814 = vmatprep.mubr.bf16.mxu0 %v2012_v2 }
  0x73   : > { %1732 = vmatmul.mubr.msk.bf16.gmra.mrb[16].mxu0 %vm442_vm0, %v368_v8 }
  0x74   : > { %824 = vmatprep.mubr.bf16.mxu0 %v2012_v2 }
  0x7b   : > { %1733 = vmatmul.mubr.msk.bf16.gmra.mrb[20].mxu0 %vm442_vm0, %v369_v11  ;;  %v939_v11 = vsub.s32 0, %v2211_v28 }
  0x7c   : > { %834 = vmatprep.mubr.bf16.mxu0 %v2012_v2 }
  0x83   : > { %1734 = vmatmul.mubr.msk.bf16.gmra.mrb[24].mxu0 %vm442_vm0, %v370_v14  ;;  %v2309_v14 = vrot.slane %v2220_v31, %v939_v11 }
  0x84   : > { %844 = vmatprep.mubr.bf16.mxu0 %v2012_v2 }
  0x8b   : > { %1735 = vmatmul.mubr.msk.bf16.gmra.mrb[28].mxu0 %vm442_vm0, %v371_v17 }
  0x8c   : > { %854 = vmatprep.mubr.bf16.mxu0 %v2012_v2 }
  0x93   : > { %1736 = vmatmul.mubr.msk.bf16.gmra.mrb[32].mxu0 %vm442_vm0, %v372_v20 }
  0x94   : > { %864 = vmatprep.mubr.bf16.mxu0 %v2012_v2 }
  0x9b   : > { %1737 = vmatmul.mubr.msk.bf16.gmra.mrb[36].mxu0 %vm442_vm0, %v373_v23 }
  0x9c   : > { %874 = vmatprep.mubr.bf16.mxu0 %v2012_v2 }
  0xa3   : > { %1738 = vmatmul.mubr.msk.bf16.gmra.mrb[40].mxu0 %vm442_vm0, %v374_v26 }
  0xa4   : > { %884 = vmatprep.mubr.bf16.mxu0 %v2012_v2 }
  0xab   : > { %1739 = vmatmul.mubr.msk.bf16.gmra.mrb[44].mxu0 %vm442_vm0, %v375_v35 }
  0xac   : > { %894 = vmatprep.mubr.bf16.mxu0 %v2012_v2 }
  0xb3   : > { %1740 = vmatmul.mubr.msk.bf16.gmra.mrb[48].mxu0 %vm442_vm0, %v376_v40 }
  0xb4   : > { %904 = vmatprep.mubr.bf16.mxu0 %v2012_v2 }
  0xbb   : > { %1741 = vmatmul.mubr.msk.bf16.gmra.mrb[52].mxu0 %vm442_vm0, %v377_v44 }
  0xbc   : > { %914 = vmatprep.mubr.bf16.mxu0 %v2012_v2 }
  0xc3   : > { %1742 = vmatmul.mubr.msk.bf16.gmra.mrb[56].mxu0 %vm442_vm0, %v378_v47 }
  0xc4   : > { %924 = vmatprep.mubr.bf16.mxu0 %v2012_v2 }
  0xcb   : > { %1743 = vmatmul.mubr.msk.bf16.gmra.mrb[60].mxu0 %vm442_vm0, %v379_v50 }
  0xe8   : > { %v2255_v51 = vpop.f32.mrb[0].mxu1 }
  0xe9   : > { %v2257_v52 = vpop.f32.mrb[1].mxu1 }
  0xea   : > { %v2259_v53 = vpop.f32.mrb[2].mxu1 }
  0xeb   : > { %v2261_v54 = vpop.f32.mrb[3].mxu1 }
  0xf0   : > { %v2263_v55 = vpop.f32.mrb[4].mxu1 }
  0xf1   : > { %v2265_v56 = vpop.f32.mrb[5].mxu1 }
  0xf2   : > { %v2267_v57 = vpop.f32.mrb[6].mxu1 }
  0xf3   : > { %v2269_v2 = vpop.f32.mrb[7].mxu1 }
  0xf8   : > { %v2271_v58 = vpop.f32.mrb[8].mxu1 }
  0xf9   : > { %v2273_v59 = vpop.f32.mrb[9].mxu1 }
  0xfa   : > { %v2275_v60 = vpop.f32.mrb[10].mxu1 }
  0xfb   : > { %v2277_v61 = vpop.f32.mrb[11].mxu1 }
 0x100   : > { %v2279_v62 = vpop.f32.mrb[12].mxu1 }
 0x101   : > { %v2281_v63 = vpop.f32.mrb[13].mxu1 }
 0x102   : > { %v2283_v0 = vpop.f32.mrb[14].mxu1 }
 0x103   : > { %v2285_v1 = vpop.f32.mrb[15].mxu1 }
 0x108   : > { %v2287_v3 = vpop.f32.mrb[16].mxu1 }
 0x109   : > { %v2289_v4 = vpop.f32.mrb[17].mxu1 }
 0x10a   : > { %v2291_v5 = vpop.f32.mrb[18].mxu1 }
 0x10b   : > { %v2293_v6 = vpop.f32.mrb[19].mxu1 }
 0x110   : > { %v2295_v7 = vpop.f32.mrb[20].mxu1 }
 0x111   : > { %v2297_v8 = vpop.f32.mrb[21].mxu1 }
 0x112   : > { %v2299_v9 = vpop.f32.mrb[22].mxu1 }
 0x113   : > { %v2301_v10 = vpop.f32.mrb[23].mxu1 }
 0x118   : > { %v2304_v12 = vpop.f32.mrb[24].mxu1 }
 0x119   : > { %v2306_v13 = vpop.f32.mrb[25].mxu1 }
 0x11a   : > { %v2311_v15 = vpop.f32.mrb[26].mxu1 }
 0x11b   : > { %v2313_v16 = vpop.f32.mrb[27].mxu1 }
 0x120   : > { %v2321_v23 = vpop.f32.mrb[28].mxu1 }
 0x121   : > { %v2326_v25 = vpop.f32.mrb[29].mxu1 }
 0x122   : > { %v2328_v28 = vpop.f32.mrb[30].mxu1 }
 0x123   : > { %v2330_v29 = vpop.f32.mrb[31].mxu1 }
 0x126   : > { %v776_v17 = vpop.f32.mrb[0].mxu0 }
 0x127   : > { %v947_v18 = vadd.f32 %v2309_v14, %v776_v17  ;;  %v2316_v19 = vpop.f32.mrb[1].mxu0  ;;  %v1999_v17 = vld [vmem:[%s2656_s7 + $0x18] sm:$0xff]  }
 0x128   : > { %v780_v20 = vpop.f32.mrb[2].mxu0 }
 0x129   : > { %v949_v21 = vadd.f32 %v2309_v14, %v780_v20  ;;  %v2319_v22 = vpop.f32.mrb[3].mxu0  ;;  %v1011_v26 = vmax.f32 %v947_v18, 0.0 }
 0x12b   : > { %v1012_v27 = vmax.f32 %v949_v21, 0.0 }
 0x12d   : > { %v1043_v30 = vpack.c.bf16 %v1012_v27, %v1011_v26 }
 0x12e   : > { %v786_v31 = vpop.f32.mrb[4].mxu0 }
 0x12f   : > { %v951_v32 = vadd.f32 %v2309_v14, %v786_v31  ;;  %v2333_v33 = vpop.f32.mrb[5].mxu0  ;;  %1827 = vmatprep.mubr.bf16.mxu1 %v1043_v30  ;;  %v2000_v30 = vld [vmem:[%s2656_s7 + $0x20] sm:$0xff]  }
 0x130   : > { %v790_v35 = vpop.f32.mrb[6].mxu0 }
 0x131   : > { %v953_v36 = vadd.f32 %v2309_v14, %v790_v35  ;;  %v2336_v37 = vpop.f32.mrb[7].mxu0  ;;  %v1013_v38 = vmax.f32 %v951_v32, 0.0 }
 0x133   : > { %v1014_v39 = vmax.f32 %v953_v36, 0.0 }
 0x135   : > { %v1044_v40 = vpack.c.bf16 %v1014_v39, %v1013_v38 }
 0x136   : > { %v796_v42 = vpop.f32.mrb[8].mxu0 }
 0x137   : > { %v955_v43 = vadd.f32 %v2309_v14, %v796_v42  ;;  %v2342_v44 = vpop.f32.mrb[9].mxu0  ;;  %1828 = vmatmul.mubr.bf16.vlgmr.msra.gmra.mrb[32].mxu1 %v1044_v40 }
 0x138   : > { %v800_v45 = vpop.f32.mrb[10].mxu0  ;;  %1860 = vmatpush3.bf16.msra.mxu1 %v1996_v24 }
 0x139   : > { %v957_v46 = vadd.f32 %v2309_v14, %v800_v45  ;;  %v2345_v47 = vpop.f32.mrb[11].mxu0  ;;  %1861 = vmatprep.subr.bf16.mxu1 %v1997_v41  ;;  %v1015_v49 = vmax.f32 %v955_v43, 0.0 }
 0x13b   : > { %v1016_v50 = vmax.f32 %v957_v46, 0.0 }
 0x13c   : > { %1862 = vmatpush3.bf16.msra.mxu1 %v1997_v41 }
 0x13d   : > { %v1045_v11 = vpack.c.bf16 %v1016_v50, %v1015_v49  ;;  %1863 = vmatprep.subr.bf16.mxu1 %v1998_v48 }
 0x13e   : > { %v806_v18 = vpop.f32.mrb[12].mxu0 }
 0x13f   : > { %v959_v20 = vadd.f32 %v2309_v14, %v806_v18  ;;  %v2354_v21 = vpop.f32.mrb[13].mxu0  ;;  %1831 = vmatprep.mubr.bf16.mxu1 %v1045_v11 }
 0x140   : > { %v810_v24 = vpop.f32.mrb[14].mxu0  ;;  %1864 = vmatpush3.bf16.msra.mxu1 %v1998_v48 }
 0x141   : > { %v961_v26 = vadd.f32 %v2309_v14, %v810_v24  ;;  %v2357_v27 = vpop.f32.mrb[15].mxu0  ;;  %1865 = vmatprep.subr.bf16.mxu1 %v1999_v17  ;;  %v1017_v31 = vmax.f32 %v959_v20, 0.0 }
 0x143   : > { %v1018_v32 = vmax.f32 %v961_v26, 0.0 }
 0x144   : > { %1866 = vmatpush3.bf16.msra.mxu1 %v1999_v17 }
 0x145   : > { %v1046_v35 = vpack.c.bf16 %v1018_v32, %v1017_v31  ;;  %1867 = vmatprep.subr.bf16.mxu1 %v2000_v30 }
 0x146   : > { %v816_v36 = vpop.f32.mrb[16].mxu0 }
 0x147   : > { %v963_v38 = vadd.f32 %v2309_v14, %v816_v36  ;;  %v2363_v39 = vpop.f32.mrb[17].mxu0  ;;  %1832 = vmatmul.mubr.bf16.gmra.mrb[36].mxu1 %v1046_v35 }
 0x148   : > { %v820_v40 = vpop.f32.mrb[18].mxu0  ;;  %1868 = vmatpush3.bf16.msra.mxu1 %v2000_v30 }
 0x149   : > { %v965_v41 = vadd.f32 %v2309_v14, %v820_v40  ;;  %v2366_v42 = vpop.f32.mrb[19].mxu0  ;;  %v1019_v43 = vmax.f32 %v963_v38, 0.0 }
 0x14b   : > { %v1020_v45 = vmax.f32 %v965_v41, 0.0 }
 0x14d   : > { %v1047_v46 = vpack.c.bf16 %v1020_v45, %v1019_v43 }
 0x14e   : > { %v826_v48 = vpop.f32.mrb[20].mxu0 }
 0x14f   : > { %v967_v49 = vadd.f32 %v2309_v14, %v826_v48  ;;  %v2369_v50 = vpop.f32.mrb[21].mxu0  ;;  %1835 = vmatprep.mubr.bf16.mxu1 %v1047_v46 }
 0x150   : > { %v830_v11 = vpop.f32.mrb[22].mxu0 }
 0x151   : > { %v969_v17 = vadd.f32 %v2309_v14, %v830_v11  ;;  %v2372_v18 = vpop.f32.mrb[23].mxu0  ;;  %v1021_v20 = vmax.f32 %v967_v49, 0.0 }
 0x153   : > { %v1022_v24 = vmax.f32 %v969_v17, 0.0 }
 0x155   : > { %v1048_v26 = vpack.c.bf16 %v1022_v24, %v1021_v20 }
 0x156   : > { %v836_v30 = vpop.f32.mrb[24].mxu0 }
 0x157   : > { %v971_v31 = vadd.f32 %v2309_v14, %v836_v30  ;;  %v2375_v32 = vpop.f32.mrb[25].mxu0  ;;  %1836 = vmatmul.mubr.bf16.gmra.mrb[40].mxu1 %v1048_v26 }
 0x158   : > { %v840_v35 = vpop.f32.mrb[26].mxu0 }
 0x159   : > { %v973_v36 = vadd.f32 %v2309_v14, %v840_v35  ;;  %v2378_v38 = vpop.f32.mrb[27].mxu0  ;;  %v1023_v40 = vmax.f32 %v971_v31, 0.0 }
 0x15b   : > { %v1024_v41 = vmax.f32 %v973_v36, 0.0 }
 0x15d   : > { %v1049_v43 = vpack.c.bf16 %v1024_v41, %v1023_v40 }
 0x15e   : > { %v846_v45 = vpop.f32.mrb[28].mxu0 }
 0x15f   : > { %v975_v46 = vadd.f32 %v2309_v14, %v846_v45  ;;  %v2381_v48 = vpop.f32.mrb[29].mxu0  ;;  %1839 = vmatprep.mubr.bf16.mxu1 %v1049_v43 }
 0x160   : > { %v850_v49 = vpop.f32.mrb[30].mxu0 }
 0x161   : > { %v977_v11 = vadd.f32 %v2309_v14, %v850_v49  ;;  %v2384_v17 = vpop.f32.mrb[31].mxu0  ;;  %v1025_v20 = vmax.f32 %v975_v46, 0.0 }
 0x163   : > { %v1026_v24 = vmax.f32 %v977_v11, 0.0 }
 0x165   : > { %v1050_v26 = vpack.c.bf16 %v1026_v24, %v1025_v20 }
 0x166   : > { %v856_v30 = vpop.f32.mrb[32].mxu0 }
 0x167   : > { %v857_v35 = vadd.f32 %v856_v30, %v2255_v51  ;;  %v858_v31 = vpop.f32.mrb[33].mxu0  ;;  %1840 = vmatmul.mubr.bf16.gmra.mrb[44].mxu1 %v1050_v26 }
 0x168   : > { %v2388_v36 = vadd.f32 %v858_v31, %v2257_v52  ;;  %v860_v40 = vpop.f32.mrb[34].mxu0 }
 0x169   : > { %v979_v41 = vadd.f32 %v2309_v14, %v857_v35  ;;  %v861_v43 = vadd.f32 %v860_v40, %v2259_v53  ;;  %v862_v45 = vpop.f32.mrb[35].mxu0 }
 0x16a   : > { %v2393_v49 = vadd.f32 %v862_v45, %v2261_v54 }
 0x16b   : > { %v981_v46 = vadd.f32 %v2309_v14, %v861_v43  ;;  %v1027_v11 = vmax.f32 %v979_v41, 0.0 }
 0x16d   : > { %v1028_v20 = vmax.f32 %v981_v46, 0.0 }
 0x16e   : > { %v866_v24 = vpop.f32.mrb[36].mxu0 }
 0x16f   : > { %v867_v51 = vadd.f32 %v866_v24, %v2263_v55  ;;  %v868_v26 = vpop.f32.mrb[37].mxu0  ;;  %v1051_v30 = vpack.c.bf16 %v1028_v20, %v1027_v11 }
 0x170   : > { %v2398_v52 = vadd.f32 %v868_v26, %v2265_v56  ;;  %v870_v31 = vpop.f32.mrb[38].mxu0 }
 0x171   : > { %v983_v35 = vadd.f32 %v2309_v14, %v867_v51  ;;  %v871_v53 = vadd.f32 %v870_v31, %v2267_v57  ;;  %v872_v40 = vpop.f32.mrb[39].mxu0  ;;  %1843 = vmatprep.mubr.bf16.mxu1 %v1051_v30 }
 0x172   : > { %v2403_v54 = vadd.f32 %v872_v40, %v2269_v2 }
 0x173   : > { %v985_v41 = vadd.f32 %v2309_v14, %v871_v53  ;;  %v1029_v43 = vmax.f32 %v983_v35, 0.0 }
 0x175   : > { %v1030_v45 = vmax.f32 %v985_v41, 0.0 }
 0x176   : > { %v876_v55 = vpop.f32.mrb[40].mxu0 }
 0x177   : > { %v877_v46 = vadd.f32 %v876_v55, %v2271_v58  ;;  %v878_v11 = vpop.f32.mrb[41].mxu0  ;;  %v1052_v56 = vpack.c.bf16 %v1030_v45, %v1029_v43 }
 0x178   : > { %v2408_v20 = vadd.f32 %v878_v11, %v2273_v59  ;;  %v880_v24 = vpop.f32.mrb[42].mxu0 }
 0x179   : > { %v987_v57 = vadd.f32 %v2309_v14, %v877_v46  ;;  %v881_v51 = vadd.f32 %v880_v24, %v2275_v60  ;;  %v882_v26 = vpop.f32.mrb[43].mxu0  ;;  %1844 = vmatmul.mubr.bf16.gmra.mrb[48].mxu1 %v1052_v56 }
 0x17a   : > { %v2413_v2 = vadd.f32 %v882_v26, %v2277_v61 }
 0x17b   : > { %v989_v30 = vadd.f32 %v2309_v14, %v881_v51  ;;  %v1031_v31 = vmax.f32 %v987_v57, 0.0 }
 0x17d   : > { %v1032_v35 = vmax.f32 %v989_v30, 0.0 }
 0x17e   : > { %v886_v58 = vpop.f32.mrb[44].mxu0 }
 0x17f   : > { %v887_v53 = vadd.f32 %v886_v58, %v2279_v62  ;;  %v888_v40 = vpop.f32.mrb[45].mxu0  ;;  %v1053_v59 = vpack.c.bf16 %v1032_v35, %v1031_v31 }
 0x180   : > { %v2418_v41 = vadd.f32 %v888_v40, %v2281_v63  ;;  %v890_v43 = vpop.f32.mrb[46].mxu0 }
 0x181   : > { %v991_v60 = vadd.f32 %v2309_v14, %v887_v53  ;;  %v891_v45 = vadd.f32 %v890_v43, %v2283_v0  ;;  %v892_v55 = vpop.f32.mrb[47].mxu0  ;;  %1847 = vmatprep.mubr.bf16.mxu1 %v1053_v59  ;;  %v2002_v53 = vld [vmem:[%s2656_s7 + $0x30] sm:$0xff]  }
 0x182   : > { %v2423_v61 = vadd.f32 %v892_v55, %v2285_v1  ;;  %v2001_v1 = vld [vmem:[%s2656_s7 + $0x28] sm:$0xff]  }
 0x183   : > { %v993_v46 = vadd.f32 %v2309_v14, %v891_v45  ;;  %v1033_v11 = vmax.f32 %v991_v60, 0.0  ;;  %1869 = vmatprep.subr.bf16.mxu1 %v2001_v1 }
 0x184   : > { %1870 = vmatpush3.bf16.msra.mxu1 %v2001_v1 }
 0x185   : > { %v1034_v56 = vmax.f32 %v993_v46, 0.0  ;;  %1871 = vmatprep.subr.bf16.mxu1 %v2002_v53 }
 0x186   : > { %v896_v62 = vpop.f32.mrb[48].mxu0 }
 0x187   : > { %v897_v24 = vadd.f32 %v896_v62, %v2287_v3  ;;  %v898_v57 = vpop.f32.mrb[49].mxu0  ;;  %v1054_v63 = vpack.c.bf16 %v1034_v56, %v1033_v11  ;;  %v2003_v11 = vld [vmem:[%s2656_s7 + $0x38] sm:$0xff]  }
 0x188   : > { %v2428_v51 = vadd.f32 %v898_v57, %v2289_v4  ;;  %v900_v26 = vpop.f32.mrb[50].mxu0  ;;  %1872 = vmatpush3.bf16.msra.mxu1 %v2002_v53 }
 0x189   : > { %v995_v0 = vadd.f32 %v2309_v14, %v897_v24  ;;  %v901_v30 = vadd.f32 %v900_v26, %v2291_v5  ;;  %v902_v31 = vpop.f32.mrb[51].mxu0  ;;  %1848 = vmatmul.mubr.bf16.gmra.mrb[52].mxu1 %v1054_v63  ;;  %1873 = vmatprep.subr.bf16.mxu1 %v2003_v11 }
 0x18a   : > { %v2436_v35 = vadd.f32 %v902_v31, %v2293_v6 }
 0x18b   : > { %v997_v3 = vadd.f32 %v2309_v14, %v901_v30  ;;  %v1035_v4 = vmax.f32 %v995_v0, 0.0 }
 0x18c   : > { %1874 = vmatpush3.bf16.msra.mxu1 %v2003_v11 }
 0x18d   : > { %v1036_v58 = vmax.f32 %v997_v3, 0.0 }
 0x18e   : > { %v906_v5 = vpop.f32.mrb[52].mxu0 }
 0x18f   : > { %v907_v40 = vadd.f32 %v906_v5, %v2295_v7  ;;  %v908_v59 = vpop.f32.mrb[53].mxu0  ;;  %v1055_v43 = vpack.c.bf16 %v1036_v58, %v1035_v4 }
 0x190   : > { %v2444_v60 = vadd.f32 %v908_v59, %v2297_v8  ;;  %v910_v6 = vpop.f32.mrb[54].mxu0 }
 0x191   : > { %v999_v45 = vadd.f32 %v2309_v14, %v907_v40  ;;  %v911_v55 = vadd.f32 %v910_v6, %v2299_v9  ;;  %v912_v46 = vpop.f32.mrb[55].mxu0  ;;  %1851 = vmatprep.mubr.bf16.mxu1 %v1055_v43 }
 0x192   : > { %v2452_v7 = vadd.f32 %v912_v46, %v2301_v10 }
 0x193   : > { %v1001_v56 = vadd.f32 %v2309_v14, %v911_v55  ;;  %v1037_v8 = vmax.f32 %v999_v45, 0.0 }
 0x195   : > { %v1038_v62 = vmax.f32 %v1001_v56, 0.0 }
 0x196   : > { %v916_v24 = vpop.f32.mrb[56].mxu0 }
 0x197   : > { %v917_v57 = vadd.f32 %v916_v24, %v2304_v12  ;;  %v918_v63 = vpop.f32.mrb[57].mxu0  ;;  %v1056_v9 = vpack.c.bf16 %v1038_v62, %v1037_v8 }
 0x198   : > { %v2457_v26 = vadd.f32 %v918_v63, %v2306_v13  ;;  %v920_v0 = vpop.f32.mrb[58].mxu0  ;;  %v948_v63 = vadd.f32 %v2227_v34, %v2316_v19 }
 0x199   : > { %v1003_v30 = vadd.f32 %v2309_v14, %v917_v57  ;;  %v921_v10 = vadd.f32 %v920_v0, %v2311_v15  ;;  %v922_v31 = vpop.f32.mrb[59].mxu0  ;;  %1852 = vmatmul.mubr.bf16.gmra.mrb[56].mxu1 %v1056_v9 }
 0x19a   : > { %v2462_v1 = vadd.f32 %v922_v31, %v2313_v16 }
 0x19b   : > { %v1005_v3 = vadd.f32 %v2309_v14, %v921_v10  ;;  %v1039_v4 = vmax.f32 %v1003_v30, 0.0  ;;  %v954_v30 = vadd.f32 %v2227_v34, %v2336_v37 }
 0x19d   : > { %v1040_v58 = vmax.f32 %v1005_v3, 0.0  ;;  %v950_v3 = vadd.f32 %v2227_v34, %v2319_v22 }
 0x19e   : > { %v926_v12 = vpop.f32.mrb[60].mxu0 }
 0x19f   : > { %v927_v53 = vadd.f32 %v926_v12, %v2321_v23  ;;  %v928_v5 = vpop.f32.mrb[61].mxu0  ;;  %v1057_v13 = vpack.c.bf16 %v1040_v58, %v1039_v4 }
 0x1a0   : > { %v2467_v40 = vadd.f32 %v928_v5, %v2326_v25  ;;  %v930_v59 = vpop.f32.mrb[62].mxu0  ;;  %v2478_v25 = vld [vmem:[%s2655_s6] ss:$0 sm:$0xff] }
 0x1a1   : > { %v1007_v15 = vadd.f32 %v2309_v14, %v927_v53  ;;  %v931_v43 = vadd.f32 %v930_v59, %v2328_v28  ;;  %v932_v6 = vpop.f32.mrb[63].mxu0  ;;  %1855 = vmatprep.mubr.bf16.mxu1 %v1057_v13 }
 0x1a2   : > { %v2472_v16 = vadd.f32 %v932_v6, %v2330_v29  ;;  %v952_v29 = vadd.f32 %v2227_v34, %v2333_v33 }
 0x1a3   : > { %v1009_v45 = vadd.f32 %v2309_v14, %v931_v43  ;;  %v1041_v55 = vmax.f32 %v1007_v15, 0.0  ;;  %v960_v43 = vadd.f32 %v2227_v34, %v2354_v21 }
 0x1a5   : > { %v1042_v46 = vmax.f32 %v1009_v45, 0.0 }
 0x1a7   : > { %v1058_v23 = vpack.c.bf16 %v1042_v46, %v1041_v55  ;;  %v956_v55 = vadd.f32 %v2227_v34, %v2342_v44 }
 0x1a9   : > { %1856 = vmatmul.mubr.bf16.gmra.mrb[60].mxu1 %v1058_v23 }
 0x20a   : > { %v1829_v11 = vpop.f32.mrb[32].mxu1 }
 0x20b   : > { %v1173_v56 = vadd.f32 %v1829_v11, %v2478_v25  ;;  %v1164_v28 = vpop.f32.mrb[33].mxu1  ;;  %v962_v11 = vadd.f32 %v2227_v34, %v2357_v27 }
 0x20c   : > { %v1165_v8 = vadd.f32 %v2478_v25, %v1164_v28  ;;  %v1830_v62 = vpop.f32.mrb[34].mxu1 }
 0x20d   : > { %v1293_v14 = vmax.f32 %v1173_v56, 0.0  ;;  %v1176_v24 = vadd.f32 %v1830_v62, %v2478_v25  ;;  %v1167_v57 = vpop.f32.mrb[35].mxu1 }
 0x20e   : > { %v1291_v9 = vmax.f32 %v1165_v8, 0.0  ;;  %v1168_v0 = vadd.f32 %v2478_v25, %v1167_v57  ;;  %v958_v8 = vadd.f32 %v2227_v34, %v2345_v47 }
 0x20f   : > { %v1325_v10 = vmul.f32 %v1293_v14, %v952_v29  ;;  %v1294_v31 = vmax.f32 %v1176_v24, 0.0 }
 0x210   : > { %v1323_v4 = vmul.f32 %v1291_v9, %v948_v63  ;;  %v1292_v33 = vmax.f32 %v1168_v0, 0.0 }
 0x211   : > { %v1326_v58 = vmul.f32 %v1294_v31, %v954_v30  ;;  %v968_v30 = vadd.f32 %v2227_v34, %v2369_v50 }
 0x212   : > { %v1324_v12 = vmul.f32 %v1292_v33, %v950_v3  ;;  %v964_v3 = vadd.f32 %v2227_v34, %v2363_v39 }
 0x213   : > { %v1356_v53 = vpack.c.bf16 %v1326_v58, %v1325_v10  ;;  %v970_v58 = vadd.f32 %v2227_v34, %v2372_v18 }
 0x214   : > { %v1355_v5 = vpack.c.bf16 %v1324_v12, %v1323_v4 }
 0x216   : > { %1875 = vmatprep.mubr.bf16.mxu1 %v1355_v5  ;;  %v966_v5 = vadd.f32 %v2227_v34, %v2366_v42 }
 0x217   : > { %1876 = vmatmul.mubr.bf16.vlgmr.msra.gmra.mrb[64].mxu1 %v1356_v53 }
 0x21a   : > { %v1833_v19 = vpop.f32.mrb[36].mxu1 }
 0x21b   : > { %v1189_v13 = vadd.f32 %v1833_v19, %v2478_v25  ;;  %v1180_v59 = vpop.f32.mrb[37].mxu1 }
 0x21c   : > { %v1181_v15 = vadd.f32 %v2478_v25, %v1180_v59  ;;  %v1834_v37 = vpop.f32.mrb[38].mxu1 }
 0x21d   : > { %v1297_v6 = vmax.f32 %v1189_v13, 0.0  ;;  %v1192_v22 = vadd.f32 %v1834_v37, %v2478_v25  ;;  %v1183_v45 = vpop.f32.mrb[39].mxu1 }
 0x21e   : > { %v1295_v46 = vmax.f32 %v1181_v15, 0.0  ;;  %v1184_v23 = vadd.f32 %v2478_v25, %v1183_v45  ;;  %v976_v45 = vadd.f32 %v2227_v34, %v2381_v48 }
 0x21f   : > { %v1329_v56 = vmul.f32 %v1297_v6, %v960_v43  ;;  %v1298_v28 = vmax.f32 %v1192_v22, 0.0 }
 0x220   : > { %v1327_v62 = vmul.f32 %v1295_v46, %v956_v55  ;;  %v1296_v21 = vmax.f32 %v1184_v23, 0.0  ;;  %v972_v23 = vadd.f32 %v2227_v34, %v2375_v32 }
 0x221   : > { %v1330_v29 = vmul.f32 %v1298_v28, %v962_v11  ;;  %v978_v28 = vadd.f32 %v2227_v34, %v2384_v17 }
 0x222   : > { %v1328_v14 = vmul.f32 %v1296_v21, %v958_v8  ;;  %v974_v21 = vadd.f32 %v2227_v34, %v2378_v38 }
 0x223   : > { %v1358_v24 = vpack.c.bf16 %v1330_v29, %v1329_v56 }
 0x224   : > { %v1357_v57 = vpack.c.bf16 %v1328_v14, %v1327_v62 }
 0x226   : > { %1879 = vmatprep.mubr.bf16.mxu1 %v1357_v57 }
 0x227   : > { %1880 = vmatmul.mubr.bf16.gmra.mrb[68].mxu1 %v1358_v24 }
 0x22a   : > { %v1837_v44 = vpop.f32.mrb[40].mxu1 }
 0x22b   : > { %v1205_v63 = vadd.f32 %v1837_v44, %v2478_v25  ;;  %v1196_v9 = vpop.f32.mrb[41].mxu1 }
 0x22c   : > { %v1197_v0 = vadd.f32 %v2478_v25, %v1196_v9  ;;  %v1838_v27 = vpop.f32.mrb[42].mxu1 }
 0x22d   : > { %v1301_v10 = vmax.f32 %v1205_v63, 0.0  ;;  %v1208_v47 = vadd.f32 %v1838_v27, %v2478_v25  ;;  %v1199_v31 = vpop.f32.mrb[43].mxu1  ;;  %v984_v27 = vadd.f32 %v2227_v34, %v2398_v52 }
 0x22e   : > { %v1299_v4 = vmax.f32 %v1197_v0, 0.0  ;;  %v1200_v33 = vadd.f32 %v2478_v25, %v1199_v31 }
 0x22f   : > { %v1333_v12 = vmul.f32 %v1301_v10, %v968_v30  ;;  %v1302_v53 = vmax.f32 %v1208_v47, 0.0  ;;  %v980_v47 = vadd.f32 %v2227_v34, %v2388_v36 }
 0x230   : > { %v1331_v19 = vmul.f32 %v1299_v4, %v964_v3  ;;  %v1300_v50 = vmax.f32 %v1200_v33, 0.0  ;;  %v986_v4 = vadd.f32 %v2227_v34, %v2403_v54 }
 0x231   : > { %v1334_v13 = vmul.f32 %v1302_v53, %v970_v58 }
 0x232   : > { %v1332_v59 = vmul.f32 %v1300_v50, %v966_v5 }
 0x233   : > { %v1360_v15 = vpack.c.bf16 %v1334_v13, %v1333_v12  ;;  %v982_v12 = vadd.f32 %v2227_v34, %v2393_v49 }
 0x234   : > { %v1359_v37 = vpack.c.bf16 %v1332_v59, %v1331_v19 }
 0x236   : > { %1883 = vmatprep.mubr.bf16.mxu1 %v1359_v37 }
 0x237   : > { %1884 = vmatmul.mubr.bf16.gmra.mrb[72].mxu1 %v1360_v15 }
 0x23a   : > { %v1841_v39 = vpop.f32.mrb[44].mxu1 }
 0x23b   : > { %v1221_v43 = vadd.f32 %v1841_v39, %v2478_v25  ;;  %v1212_v6 = vpop.f32.mrb[45].mxu1  ;;  %v992_v39 = vadd.f32 %v2227_v34, %v2418_v41 }
 0x23c   : > { %v1213_v22 = vadd.f32 %v2478_v25, %v1212_v6  ;;  %v1842_v18 = vpop.f32.mrb[46].mxu1 }
 0x23d   : > { %v1305_v55 = vmax.f32 %v1221_v43, 0.0  ;;  %v1224_v42 = vadd.f32 %v1842_v18, %v2478_v25  ;;  %v1215_v46 = vpop.f32.mrb[47].mxu1 }
 0x23e   : > { %v1303_v11 = vmax.f32 %v1213_v22, 0.0  ;;  %v1216_v56 = vadd.f32 %v2478_v25, %v1215_v46  ;;  %v988_v22 = vadd.f32 %v2227_v34, %v2408_v20 }
 0x23f   : > { %v1337_v8 = vmul.f32 %v1305_v55, %v976_v45  ;;  %v1306_v62 = vmax.f32 %v1224_v42, 0.0  ;;  %v994_v55 = vadd.f32 %v2227_v34, %v2423_v61 }
 0x240   : > { %v1335_v29 = vmul.f32 %v1303_v11, %v972_v23  ;;  %v1304_v48 = vmax.f32 %v1216_v56, 0.0  ;;  %v990_v23 = vadd.f32 %v2227_v34, %v2413_v2 }
 0x241   : > { %v1338_v14 = vmul.f32 %v1306_v62, %v978_v28 }
 0x242   : > { %v1336_v24 = vmul.f32 %v1304_v48, %v974_v21 }
 0x243   : > { %v1362_v57 = vpack.c.bf16 %v1338_v14, %v1337_v8  ;;  %v1000_v14 = vadd.f32 %v2227_v34, %v2444_v60 }
 0x244   : > { %v1361_v44 = vpack.c.bf16 %v1336_v24, %v1335_v29 }
 0x246   : > { %1887 = vmatprep.mubr.bf16.mxu1 %v1361_v44  ;;  %v996_v44 = vadd.f32 %v2227_v34, %v2428_v51 }
 0x247   : > { %1888 = vmatmul.mubr.bf16.gmra.mrb[76].mxu1 %v1362_v57 }
 0x24c   : > { %v1845_v32 = vpop.f32.mrb[48].mxu1 }
 0x24d   : > { %v1237_v63 = vadd.f32 %v1845_v32, %v2478_v25  ;;  %v1228_v9 = vpop.f32.mrb[49].mxu1 }
 0x24e   : > { %v1229_v0 = vadd.f32 %v2478_v25, %v1228_v9  ;;  %v1846_v17 = vpop.f32.mrb[50].mxu1  ;;  %v1002_v9 = vadd.f32 %v2227_v34, %v2452_v7 }
 0x24f   : > { %v1309_v30 = vmax.f32 %v1237_v63, 0.0  ;;  %v1240_v38 = vadd.f32 %v1846_v17, %v2478_v25  ;;  %v1231_v10 = vpop.f32.mrb[51].mxu1 }
 0x250   : > { %v1307_v31 = vmax.f32 %v1229_v0, 0.0  ;;  %v1232_v3 = vadd.f32 %v2478_v25, %v1231_v10 }
 0x251   : > { %v1341_v33 = vmul.f32 %v1309_v30, %v984_v27  ;;  %v1310_v58 = vmax.f32 %v1240_v38, 0.0  ;;  %v998_v27 = vadd.f32 %v2227_v34, %v2436_v35 }
 0x252   : > { %v1339_v53 = vmul.f32 %v1307_v31, %v980_v47  ;;  %v1308_v52 = vmax.f32 %v1232_v3, 0.0 }
 0x253   : > { %v1342_v5 = vmul.f32 %v1310_v58, %v986_v4  ;;  %v1008_v58 = vadd.f32 %v2227_v34, %v2467_v40 }
 0x254   : > { %v1340_v19 = vmul.f32 %v1308_v52, %v982_v12  ;;  %v1004_v52 = vadd.f32 %v2227_v34, %v2457_v26 }
 0x255   : > { %v1364_v50 = vpack.c.bf16 %v1342_v5, %v1341_v33 }
 0x256   : > { %v1363_v13 = vpack.c.bf16 %v1340_v19, %v1339_v53 }
 0x258   : > { %1891 = vmatprep.mubr.bf16.mxu1 %v1363_v13 }
 0x259   : > { %1892 = vmatmul.mubr.bf16.gmra.mrb[80].mxu1 %v1364_v50  ;;  %v1010_v50 = vadd.f32 %v2227_v34, %v2472_v16 }
 0x25c   : > { %v1849_v36 = vpop.f32.mrb[52].mxu1 }
 0x25d   : > { %v1253_v59 = vadd.f32 %v1849_v36, %v2478_v25  ;;  %v1244_v15 = vpop.f32.mrb[53].mxu1 }
 0x25e   : > { %v1245_v37 = vadd.f32 %v2478_v25, %v1244_v15  ;;  %v1850_v54 = vpop.f32.mrb[54].mxu1 }
 0x25f   : > { %v1313_v43 = vmax.f32 %v1253_v59, 0.0  ;;  %v1256_v49 = vadd.f32 %v1850_v54, %v2478_v25  ;;  %v1247_v6 = vpop.f32.mrb[55].mxu1  ;;  %v1006_v59 = vadd.f32 %v2227_v34, %v2462_v1 }
 0x260   : > { %v1311_v18 = vmax.f32 %v1245_v37, 0.0  ;;  %v1248_v45 = vadd.f32 %v2478_v25, %v1247_v6 }
 0x261   : > { %v1345_v42 = vmul.f32 %v1313_v43, %v992_v39  ;;  %v1314_v46 = vmax.f32 %v1256_v49, 0.0 }
 0x262   : > { %v1343_v11 = vmul.f32 %v1311_v18, %v988_v22  ;;  %v1312_v41 = vmax.f32 %v1248_v45, 0.0 }
 0x263   : > { %v1346_v56 = vmul.f32 %v1314_v46, %v994_v55 }
 0x264   : > { %v1344_v28 = vmul.f32 %v1312_v41, %v990_v23 }
 0x265   : > { %v1366_v8 = vpack.c.bf16 %v1346_v56, %v1345_v42 }
 0x266   : > { %v1365_v62 = vpack.c.bf16 %v1344_v28, %v1343_v11 }
 0x268   : > { %1895 = vmatprep.mubr.bf16.mxu1 %v1365_v62 }
 0x269   : > { %1896 = vmatmul.mubr.bf16.gmra.mrb[84].mxu1 %v1366_v8 }
 0x26c   : > { %v1853_v20 = vpop.f32.mrb[56].mxu1 }
 0x26d   : > { %v1269_v21 = vadd.f32 %v1853_v20, %v2478_v25  ;;  %v1260_v29 = vpop.f32.mrb[57].mxu1 }
 0x26e   : > { %v1261_v48 = vadd.f32 %v2478_v25, %v1260_v29  ;;  %v1854_v61 = vpop.f32.mrb[58].mxu1 }
 0x26f   : > { %v1317_v24 = vmax.f32 %v1269_v21, 0.0  ;;  %v1272_v2 = vadd.f32 %v1854_v61, %v2478_v25  ;;  %v1263_v57 = vpop.f32.mrb[59].mxu1 }
 0x270   : > { %v1315_v32 = vmax.f32 %v1261_v48, 0.0  ;;  %v1264_v63 = vadd.f32 %v2478_v25, %v1263_v57 }
 0x271   : > { %v1349_v0 = vmul.f32 %v1317_v24, %v1000_v14  ;;  %v1318_v17 = vmax.f32 %v1272_v2, 0.0 }
 0x272   : > { %v1347_v30 = vmul.f32 %v1315_v32, %v996_v44  ;;  %v1316_v60 = vmax.f32 %v1264_v63, 0.0 }
 0x273   : > { %v1350_v38 = vmul.f32 %v1318_v17, %v1002_v9 }
 0x274   : > { %v1348_v10 = vmul.f32 %v1316_v60, %v998_v27 }
 0x275   : > { %v1368_v47 = vpack.c.bf16 %v1350_v38, %v1349_v0 }
 0x276   : > { %v1367_v31 = vpack.c.bf16 %v1348_v10, %v1347_v30 }
 0x278   : > { %1899 = vmatprep.mubr.bf16.mxu1 %v1367_v31 }
 0x279   : > { %1900 = vmatmul.mubr.bf16.gmra.mrb[88].mxu1 %v1368_v47 }
 0x27c   : > { %v1857_v51 = vpop.f32.mrb[60].mxu1 }
 0x27d   : > { %v1285_v3 = vadd.f32 %v1857_v51, %v2478_v25  ;;  %v1276_v4 = vpop.f32.mrb[61].mxu1 }
 0x27e   : > { %v1277_v33 = vadd.f32 %v2478_v25, %v1276_v4  ;;  %v1858_v7 = vpop.f32.mrb[62].mxu1 }
 0x27f   : > { %v1321_v12 = vmax.f32 %v1285_v3, 0.0  ;;  %v1288_v35 = vadd.f32 %v1858_v7, %v2478_v25  ;;  %v1279_v53 = vpop.f32.mrb[63].mxu1 }
 0x280   : > { %v1319_v5 = vmax.f32 %v1277_v33, 0.0  ;;  %v1280_v19 = vadd.f32 %v2478_v25, %v1279_v53 }
 0x281   : > { %v1353_v13 = vmul.f32 %v1321_v12, %v1008_v58  ;;  %v1322_v36 = vmax.f32 %v1288_v35, 0.0 }
 0x282   : > { %v1351_v40 = vmul.f32 %v1319_v5, %v1004_v52  ;;  %v1320_v15 = vmax.f32 %v1280_v19, 0.0 }
 0x283   : > { %v1354_v37 = vmul.f32 %v1322_v36, %v1010_v50 }
 0x284   : > { %v1352_v54 = vmul.f32 %v1320_v15, %v1006_v59 }
 0x285   : > { %v1370_v39 = vpack.c.bf16 %v1354_v37, %v1353_v13 }
 0x286   : > { %v1369_v43 = vpack.c.bf16 %v1352_v54, %v1351_v40 }
 0x288   : > { %1903 = vmatprep.mubr.bf16.mxu1 %v1369_v43 }
 0x289   : > { %1904 = vmatmul.mubr.bf16.gmra.mrb[92].mxu1 %v1370_v39 }
 0x2ea   : > { %v1877_v34 = vpop.f32.mrb[64].mxu1 }
 0x2eb   : > { %1599 = vst.msk [vmem:[%s2580_s21 + $0x10] sm:$0xff] %vm1596_vm1, %v1877_v34  ;;  %v1469_v26 = vpop.f32.mrb[65].mxu1 }
 0x2ec   : > { %1597 = vst.msk [vmem:[%s2580_s21] sm:$0xff] %vm1596_vm1, %v1469_v26  ;;  %v1878_v1 = vpop.f32.mrb[66].mxu1 }
 0x2ed   : > { %1600 = vst.msk [vmem:[%s2580_s21 + $0x18] sm:$0xff] %vm1596_vm1, %v1878_v1  ;;  %v1472_v16 = vpop.f32.mrb[67].mxu1 }
 0x2ee   : > { %1598 = vst.msk [vmem:[%s2580_s21 + $0x8] sm:$0xff] %vm1596_vm1, %v1472_v16 }
 0x2fa   : > { %v1881_v25 = vpop.f32.mrb[68].mxu1 }
 0x2fb   : > { %1603 = vst.msk [vmem:[%s2580_s21 + $0x30] sm:$0xff] %vm1596_vm1, %v1881_v25  ;;  %v1485_v49 = vpop.f32.mrb[69].mxu1 }
 0x2fc   : > { %1601 = vst.msk [vmem:[%s2580_s21 + $0x20] sm:$0xff] %vm1596_vm1, %v1485_v49  ;;  %v1882_v6 = vpop.f32.mrb[70].mxu1 }
 0x2fd   : > { %1604 = vst.msk [vmem:[%s2580_s21 + $0x38] sm:$0xff] %vm1596_vm1, %v1882_v6  ;;  %v1488_v22 = vpop.f32.mrb[71].mxu1 }
 0x2fe   : > { %1602 = vst.msk [vmem:[%s2580_s21 + $0x28] sm:$0xff] %vm1596_vm1, %v1488_v22 }
 0x30a   : > { %v1885_v18 = vpop.f32.mrb[72].mxu1 }
 0x30b   : > { %1607 = vst.msk [vmem:[%s2580_s21 + $0x50] sm:$0xff] %vm1596_vm1, %v1885_v18  ;;  %v1501_v45 = vpop.f32.mrb[73].mxu1 }
 0x30c   : > { %1605 = vst.msk [vmem:[%s2580_s21 + $0x40] sm:$0xff] %vm1596_vm1, %v1501_v45  ;;  %v1886_v55 = vpop.f32.mrb[74].mxu1 }
 0x30d   : > { %1608 = vst.msk [vmem:[%s2580_s21 + $0x58] sm:$0xff] %vm1596_vm1, %v1886_v55  ;;  %v1504_v42 = vpop.f32.mrb[75].mxu1 }
 0x30e   : > { %1606 = vst.msk [vmem:[%s2580_s21 + $0x48] sm:$0xff] %vm1596_vm1, %v1504_v42 }
 0x31a   : > { %v1889_v46 = vpop.f32.mrb[76].mxu1 }
 0x31b   : > { %1611 = vst.msk [vmem:[%s2580_s21 + $0x70] sm:$0xff] %vm1596_vm1, %v1889_v46  ;;  %v1517_v23 = vpop.f32.mrb[77].mxu1 }
 0x31c   : > { %1609 = vst.msk [vmem:[%s2580_s21 + $0x60] sm:$0xff] %vm1596_vm1, %v1517_v23  ;;  %v1890_v11 = vpop.f32.mrb[78].mxu1 }
 0x31d   : > { %1612 = vst.msk [vmem:[%s2580_s21 + $0x78] sm:$0xff] %vm1596_vm1, %v1890_v11  ;;  %v1520_v41 = vpop.f32.mrb[79].mxu1 }
 0x31e   : > { %1610 = vst.msk [vmem:[%s2580_s21 + $0x68] sm:$0xff] %vm1596_vm1, %v1520_v41 }
 0x32c   : > { %v1893_v56 = vpop.f32.mrb[80].mxu1 }
 0x32d   : > { %1615 = vst.msk [vmem:[%s2580_s21 + $0x90] sm:$0xff] %vm1596_vm1, %v1893_v56  ;;  %v1533_v28 = vpop.f32.mrb[81].mxu1 }
 0x32e   : > { %1613 = vst.msk [vmem:[%s2580_s21 + $0x80] sm:$0xff] %vm1596_vm1, %v1533_v28  ;;  %v1894_v8 = vpop.f32.mrb[82].mxu1 }
 0x32f   : > { %1616 = vst.msk [vmem:[%s2580_s21 + $0x98] sm:$0xff] %vm1596_vm1, %v1894_v8  ;;  %v1536_v62 = vpop.f32.mrb[83].mxu1 }
 0x330   : > { %1614 = vst.msk [vmem:[%s2580_s21 + $0x88] sm:$0xff] %vm1596_vm1, %v1536_v62 }
 0x33c   : > { %v1897_v20 = vpop.f32.mrb[84].mxu1 }
 0x33d   : > { %1619 = vst.msk [vmem:[%s2580_s21 + $0xb0] sm:$0xff] %vm1596_vm1, %v1897_v20  ;;  %v1549_v21 = vpop.f32.mrb[85].mxu1 }
 0x33e   : > { %1617 = vst.msk [vmem:[%s2580_s21 + $0xa0] sm:$0xff] %vm1596_vm1, %v1549_v21  ;;  %v1898_v29 = vpop.f32.mrb[86].mxu1 }
 0x33f   : > { %1620 = vst.msk [vmem:[%s2580_s21 + $0xb8] sm:$0xff] %vm1596_vm1, %v1898_v29  ;;  %v1552_v48 = vpop.f32.mrb[87].mxu1 }
 0x340   : > { %1618 = vst.msk [vmem:[%s2580_s21 + $0xa8] sm:$0xff] %vm1596_vm1, %v1552_v48 }
 0x34c   : > { %v1901_v61 = vpop.f32.mrb[88].mxu1 }
 0x34d   : > { %1623 = vst.msk [vmem:[%s2580_s21 + $0xd0] sm:$0xff] %vm1596_vm1, %v1901_v61  ;;  %v1565_v14 = vpop.f32.mrb[89].mxu1 }
 0x34e   : > { %1621 = vst.msk [vmem:[%s2580_s21 + $0xc0] sm:$0xff] %vm1596_vm1, %v1565_v14  ;;  %v1902_v24 = vpop.f32.mrb[90].mxu1 }
 0x34f   : > { %1624 = vst.msk [vmem:[%s2580_s21 + $0xd8] sm:$0xff] %vm1596_vm1, %v1902_v24  ;;  %v1568_v2 = vpop.f32.mrb[91].mxu1 }
 0x350   : > { %1622 = vst.msk [vmem:[%s2580_s21 + $0xc8] sm:$0xff] %vm1596_vm1, %v1568_v2 }
 0x35c   : > { %v1905_v57 = vpop.f32.mrb[92].mxu1 }
 0x35d   : > { %1627 = vst.msk [vmem:[%s2580_s21 + $0xf0] sm:$0xff] %vm1596_vm1, %v1905_v57  ;;  %v1581_v44 = vpop.f32.mrb[93].mxu1 }
 0x35e   : > { %1625 = vst.msk [vmem:[%s2580_s21 + $0xe0] sm:$0xff] %vm1596_vm1, %v1581_v44  ;;  %v1906_v32 = vpop.f32.mrb[94].mxu1 }
 0x35f   : > { %1628 = vst.msk [vmem:[%s2580_s21 + $0xf8] sm:$0xff] %vm1596_vm1, %v1906_v32  ;;  %v1584_v63 = vpop.f32.mrb[95].mxu1 }
 0x360   : > { %1626 = vst.msk [vmem:[%s2580_s21 + $0xe8] sm:$0xff] %vm1596_vm1, %v1584_v63 }
 0x361 PF: > { %s18_s27 = sadd.s32 1, %s2010_s27  }
 0x362   : > { %p15_p4 = scmp.ge.s32.totalorder %s18_s27, 4  }
 0x364   :  { %17 = sbr.rel (!%p15_p4) target bundleno = 1 (0x1), region = 85 }

</bundles_post_ra>
